<compile_context>
chip_gen: v7x
topology: tpu7x:2x2x1
jax: 0.10.0
libtpu: 0.0.40
codegen_flags: <defaults>
</compile_context>

<pallas_src>
import functools
import math

import jax
import jax.numpy as jnp
from jax import lax
from jax.experimental import pallas as pl
from jax.experimental.pallas import tpu as pltpu

_TWO_PI = 2.0 * math.pi


def _mix32(x):
    """lowbias32-style integer hash on uint32 (wraps mod 2**32)."""
    x = x ^ lax.shift_right_logical(x, jnp.uint32(16))
    x = x * jnp.uint32(0x7FEB352D)
    x = x ^ lax.shift_right_logical(x, jnp.uint32(15))
    x = x * jnp.uint32(0x846CA68B)
    x = x ^ lax.shift_right_logical(x, jnp.uint32(16))
    return x


def _uniform01(key_u32):
    """uint32 key array -> f32 uniform in [0, 1) (23-bit resolution)."""
    x = _mix32(key_u32)
    x = _mix32(x ^ jnp.uint32(0x9E3779B9))
    mant = lax.shift_right_logical(x, jnp.uint32(9))        # < 2**23
    return mant.astype(jnp.int32).astype(jnp.float32) * jnp.float32(1.0 / (1 << 23))
    # TODO(synk): not bit-identical to torch.rand_like; same uniform [0,1) distribution.


def _bg_noise_kernel(seed_ref, img_ref, out_ref, *, hsv_min, hsv_max, compute_hue, eps):
    # img_ref / out_ref: (3, tH, Wp)  (batch dim squeezed by BlockSpec)
    r = img_ref[0]
    g = img_ref[1]
    b = img_ref[2]

    # --- kornia.color.rgb_to_hsv (eps = 1e-8), S/V part ---
    maxc = jnp.maximum(jnp.maximum(r, g), b)
    minc = jnp.minimum(jnp.minimum(r, g), b)
    v = maxc
    deltac = maxc - minc
    vp = v + jnp.float32(eps)                                 # > 0 for valid images

    h_min, s_min, v_min = hsv_min
    h_max, s_max, v_max = hsv_max

    # s = deltac / (v + eps); compare via multiplies instead of dividing.
    in_range = ((deltac >= jnp.float32(s_min) * vp)
                & (deltac <= jnp.float32(s_max) * vp)
                & (v >= jnp.float32(v_min))
                & (v <= jnp.float32(v_max)))

    if compute_hue:  # statically skipped when hue range covers [0, 2*pi]
        deltac_safe = jnp.where(deltac == 0.0, jnp.float32(1.0), deltac)
        rc = maxc - r
        gc = maxc - g
        bc = maxc - b
        h_if_r = bc - gc
        h_if_g = (rc - bc) + 2.0 * deltac_safe
        h_if_b = (gc - rc) + 4.0 * deltac_safe
        is_r = r == maxc
        is_g = (g == maxc) & jnp.logical_not(is_r)
        h = jnp.where(is_r, h_if_r, jnp.where(is_g, h_if_g, h_if_b)) / deltac_safe
        t = h * jnp.float32(1.0 / 6.0)
        h = jnp.float32(_TWO_PI) * (t - jnp.floor(t))         # (h/6) % 1, then *2*pi
        in_range = in_range & (h >= jnp.float32(h_min)) & (h <= jnp.float32(h_max))

    # --- uniform [0, 1) noise from a counter-based hash (unique per pixel/channel/block) ---
    tH, Wp = r.shape
    blk = pl.program_id(0) * pl.num_programs(1) + pl.program_id(1)   # flat step id
    row = lax.broadcasted_iota(jnp.int32, (tH, Wp), 0).astype(jnp.uint32)
    col = lax.broadcasted_iota(jnp.int32, (tH, Wp), 1).astype(jnp.uint32)
    pix = (blk.astype(jnp.uint32) * jnp.uint32(tH) + row) * jnp.uint32(Wp) + col
    seed_u = seed_ref[0].astype(jnp.uint32)
    base = pix * jnp.uint32(3) + seed_u * jnp.uint32(0x85EBCA6B)

    out_ref[0] = jnp.where(in_range, _uniform01(base), r)
    out_ref[1] = jnp.where(in_range, _uniform01(base + jnp.uint32(1)), g)
    out_ref[2] = jnp.where(in_range, _uniform01(base + jnp.uint32(2)), b)


def random_background_noise(img, seed=0, *,
                            hsv_min=(0.0, 0.0, 0.0),
                            hsv_max=(_TWO_PI, 0.02, 0.02),
                            block_bytes=2 * 1024 * 1024):
    """img: float32 (B, 3, H, W) RGB in [0, 1]. Returns same-shape float32."""
    B, C, H, W = img.shape
    assert C == 3, "expects RGB input (NCHW)"
    img = img.astype(jnp.float32)

    LANE, SUB = 128, 8
    Wp = ((W + LANE - 1) // LANE) * LANE                      # lane-dense last dim

    # Tile height: ~block_bytes per (3, tH, Wp) f32 block, multiple of 8.
    tH = block_bytes // (3 * Wp * 4)
    tH = max(SUB, min(tH, 512))
    tH = (tH // SUB) * SUB
    h_ceil = ((H + SUB - 1) // SUB) * SUB
    tH = min(tH, h_ceil)
    Hp = ((H + tH - 1) // tH) * tH

    if (Hp, Wp) != (H, W):
        # Padded pixels are zeros -> classified background -> noise -> cropped away.
        img = jnp.pad(img, ((0, 0), (0, 0), (0, Hp - H), (0, Wp - W)))

    # Hue fast path: the module default range [0, 2*pi] accepts every hue.
    compute_hue = not (hsv_min[0] <= 0.0 and hsv_max[0] >= _TWO_PI - 1e-6)

    kernel = functools.partial(
        _bg_noise_kernel,
        hsv_min=tuple(float(x) for x in hsv_min),
        hsv_max=tuple(float(x) for x in hsv_max),
        compute_hue=compute_hue,
        eps=1e-8,
    )

    seed_arr = jnp.array([seed], dtype=jnp.int32)
    n_h = Hp // tH

    out = pl.pallas_call(
        kernel,
        out_shape=jax.ShapeDtypeStruct((B, C, Hp, Wp), jnp.float32),
        grid=(B, n_h),
        in_specs=[
            pl.BlockSpec(memory_space=pltpu.MemorySpace.SMEM),            # seed
            pl.BlockSpec((None, C, tH, Wp), lambda b, h: (b, 0, h, 0)),   # img (batch squeezed)
        ],
        out_specs=pl.BlockSpec((None, C, tH, Wp), lambda b, h: (b, 0, h, 0)),
        compiler_params=pltpu.CompilerParams(
            dimension_semantics=("parallel", "parallel"),
            vmem_limit_bytes=48 * 1024 * 1024,
        ),
    )(seed_arr, img)

    if (Hp, Wp) != (H, W):
        out = out[:, :, :H, :W]
    return out


def _reference_mask(img):
    """Plain-JAX background mask (same math) for a sanity check."""
    eps = 1e-8
    r, g, b = img[:, 0], img[:, 1], img[:, 2]
    maxc = jnp.maximum(jnp.maximum(r, g), b)
    minc = jnp.minimum(jnp.minimum(r, g), b)
    v = maxc
    s = (maxc - minc) / (v + eps)
    # hue is always inside the default [0, 2*pi] range
    return (s <= 0.02) & (v <= 0.02)


if __name__ == "__main__":
    key = jax.random.PRNGKey(0)
    B, C, H, W = 2, 3, 16, 16
    # Bright foreground ...
    img = jax.random.uniform(key, (B, C, H, W), jnp.float32, minval=0.2, maxval=1.0)
    # ... with a black (background) square that should be replaced by noise.
    img = img.at[:, :, 4:12, 4:12].set(0.0)

    out = jax.block_until_ready(random_background_noise(img, seed=0))

    mask = _reference_mask(img)[:, None]                      # (B, 1, H, W)
    fg_same = bool(jnp.all(jnp.where(mask, True, out == img)))
    bg_in_range = bool(jnp.all(jnp.where(mask, (out >= 0.0) & (out < 1.0), True)))

    assert out.shape == img.shape and out.dtype == jnp.float32
    assert fg_same, "foreground pixels were modified"
    assert bg_in_range, "background noise outside [0,1)"

    print("KERNEL_OK")
</pallas_src>

<mosaic_0001>
module attributes {stable_mosaic.version = 11 : i64} {
  func.func @_bg_noise_kernel(%arg0: i32, %arg1: i32, %arg2: memref<1xi32, #tpu.memory_space<smem>>, %arg3: memref<1x3x16x128xf32, #tpu.memory_space<vmem>>, %arg4: memref<1x3x16x128xf32, #tpu.memory_space<vmem>>) attributes {dimension_semantics = [#tpu.dimension_semantics<parallel>, #tpu.dimension_semantics<parallel>], iteration_bounds = array<i64: 2, 1>, scalar_prefetch = 0 : i64, scratch_operands = 0 : i64, tpu.core_type = #tpu.core_type<tc>, window_params = [{transform_indices = @transform_0, window_bounds = array<i64: 1>}, {transform_indices = @transform_1, window_bounds = array<i64: 1, 3, 16, 128>}, {transform_indices = @transform_2, window_bounds = array<i64: 1, 3, 16, 128>}]} {
    %c0 = arith.constant 0 : index
    %c0_0 = arith.constant 0 : index
    %c0_1 = arith.constant 0 : index
    %c0_2 = arith.constant 0 : index
    %0 = vector.load %arg3[%c0, %c0_0, %c0_1, %c0_2] : memref<1x3x16x128xf32, #tpu.memory_space<vmem>>, vector<1x1x16x128xf32>
    %1 = vector.shape_cast %0 : vector<1x1x16x128xf32> to vector<16x128xf32>
    %c0_3 = arith.constant 0 : index
    %c1 = arith.constant 1 : index
    %c0_4 = arith.constant 0 : index
    %c0_5 = arith.constant 0 : index
    %2 = vector.load %arg3[%c0_3, %c1, %c0_4, %c0_5] : memref<1x3x16x128xf32, #tpu.memory_space<vmem>>, vector<1x1x16x128xf32>
    %3 = vector.shape_cast %2 : vector<1x1x16x128xf32> to vector<16x128xf32>
    %c0_6 = arith.constant 0 : index
    %c2 = arith.constant 2 : index
    %c0_7 = arith.constant 0 : index
    %c0_8 = arith.constant 0 : index
    %4 = vector.load %arg3[%c0_6, %c2, %c0_7, %c0_8] : memref<1x3x16x128xf32, #tpu.memory_space<vmem>>, vector<1x1x16x128xf32>
    %5 = vector.shape_cast %4 : vector<1x1x16x128xf32> to vector<16x128xf32>
    %6 = arith.maximumf %1, %3 : vector<16x128xf32>
    %7 = arith.maximumf %6, %5 : vector<16x128xf32>
    %8 = arith.minimumf %1, %3 : vector<16x128xf32>
    %9 = arith.minimumf %8, %5 : vector<16x128xf32>
    %10 = arith.subf %7, %9 : vector<16x128xf32>
    %cst = arith.constant 9.99999993E-9 : f32
    %11 = vector.broadcast %cst : f32 to vector<16x128xf32>
    %12 = arith.addf %7, %11 : vector<16x128xf32>
    %cst_9 = arith.constant 0.000000e+00 : f32
    %13 = vector.broadcast %cst_9 : f32 to vector<16x128xf32>
    %14 = arith.mulf %13, %12 : vector<16x128xf32>
    %15 = arith.cmpf oge, %10, %14 : vector<16x128xf32>
    %cst_10 = arith.constant 2.000000e-02 : f32
    %16 = vector.broadcast %cst_10 : f32 to vector<16x128xf32>
    %17 = arith.mulf %16, %12 : vector<16x128xf32>
    %18 = arith.cmpf ole, %10, %17 : vector<16x128xf32>
    %19 = arith.andi %15, %18 : vector<16x128xi1>
    %cst_11 = arith.constant 0.000000e+00 : f32
    %20 = vector.broadcast %cst_11 : f32 to vector<16x128xf32>
    %21 = arith.cmpf oge, %7, %20 : vector<16x128xf32>
    %22 = arith.andi %19, %21 : vector<16x128xi1>
    %cst_12 = arith.constant 2.000000e-02 : f32
    %23 = vector.broadcast %cst_12 : f32 to vector<16x128xf32>
    %24 = arith.cmpf ole, %7, %23 : vector<16x128xf32>
    %25 = arith.andi %22, %24 : vector<16x128xi1>
    %c1_i32 = arith.constant 1 : i32
    %26 = arith.muli %arg0, %c1_i32 : i32
    %27 = arith.addi %26, %arg1 : i32
    %28 = tpu.iota {dimensions = array<i32: 0>} : vector<16x128xi32>
    %29 = tpu.iota {dimensions = array<i32: 1>} : vector<16x128xi32>
    %c16_i32 = arith.constant 16 : i32
    %30 = arith.muli %27, %c16_i32 : i32
    %31 = vector.broadcast %30 : i32 to vector<16x128xi32>
    %32 = arith.addi %31, %28 : vector<16x128xi32>
    %c128_i32 = arith.constant 128 : i32
    %33 = vector.broadcast %c128_i32 : i32 to vector<16x128xi32>
    %34 = arith.muli %32, %33 : vector<16x128xi32>
    %35 = arith.addi %34, %29 : vector<16x128xi32>
    %c0_13 = arith.constant 0 : index
    %36 = memref.load %arg2[%c0_13] : memref<1xi32, #tpu.memory_space<smem>>
    %c3_i32 = arith.constant 3 : i32
    %37 = vector.broadcast %c3_i32 : i32 to vector<16x128xi32>
    %38 = arith.muli %35, %37 : vector<16x128xi32>
    %c-2048144789_i32 = arith.constant -2048144789 : i32
    %39 = arith.muli %36, %c-2048144789_i32 : i32
    %40 = vector.broadcast %39 : i32 to vector<16x128xi32>
    %41 = arith.addi %38, %40 : vector<16x128xi32>
    %c16_i32_14 = arith.constant 16 : i32
    %42 = vector.broadcast %c16_i32_14 : i32 to vector<16x128xi32>
    %43 = arith.shrui %41, %42 : vector<16x128xi32>
    %44 = arith.xori %41, %43 : vector<16x128xi32>
    %c2146121005_i32 = arith.constant 2146121005 : i32
    %45 = vector.broadcast %c2146121005_i32 : i32 to vector<16x128xi32>
    %46 = arith.muli %44, %45 : vector<16x128xi32>
    %c15_i32 = arith.constant 15 : i32
    %47 = vector.broadcast %c15_i32 : i32 to vector<16x128xi32>
    %48 = arith.shrui %46, %47 : vector<16x128xi32>
    %49 = arith.xori %46, %48 : vector<16x128xi32>
    %c-2073254261_i32 = arith.constant -2073254261 : i32
    %50 = vector.broadcast %c-2073254261_i32 : i32 to vector<16x128xi32>
    %51 = arith.muli %49, %50 : vector<16x128xi32>
    %c16_i32_15 = arith.constant 16 : i32
    %52 = vector.broadcast %c16_i32_15 : i32 to vector<16x128xi32>
    %53 = arith.shrui %51, %52 : vector<16x128xi32>
    %54 = arith.xori %51, %53 : vector<16x128xi32>
    %c-1640531527_i32 = arith.constant -1640531527 : i32
    %55 = vector.broadcast %c-1640531527_i32 : i32 to vector<16x128xi32>
    %56 = arith.xori %54, %55 : vector<16x128xi32>
    %c16_i32_16 = arith.constant 16 : i32
    %57 = vector.broadcast %c16_i32_16 : i32 to vector<16x128xi32>
    %58 = arith.shrui %56, %57 : vector<16x128xi32>
    %59 = arith.xori %56, %58 : vector<16x128xi32>
    %c2146121005_i32_17 = arith.constant 2146121005 : i32
    %60 = vector.broadcast %c2146121005_i32_17 : i32 to vector<16x128xi32>
    %61 = arith.muli %59, %60 : vector<16x128xi32>
    %c15_i32_18 = arith.constant 15 : i32
    %62 = vector.broadcast %c15_i32_18 : i32 to vector<16x128xi32>
    %63 = arith.shrui %61, %62 : vector<16x128xi32>
    %64 = arith.xori %61, %63 : vector<16x128xi32>
    %c-2073254261_i32_19 = arith.constant -2073254261 : i32
    %65 = vector.broadcast %c-2073254261_i32_19 : i32 to vector<16x128xi32>
    %66 = arith.muli %64, %65 : vector<16x128xi32>
    %c16_i32_20 = arith.constant 16 : i32
    %67 = vector.broadcast %c16_i32_20 : i32 to vector<16x128xi32>
    %68 = arith.shrui %66, %67 : vector<16x128xi32>
    %69 = arith.xori %66, %68 : vector<16x128xi32>
    %c9_i32 = arith.constant 9 : i32
    %70 = vector.broadcast %c9_i32 : i32 to vector<16x128xi32>
    %71 = arith.shrui %69, %70 : vector<16x128xi32>
    %72 = arith.sitofp %71 : vector<16x128xi32> to vector<16x128xf32>
    %cst_21 = arith.constant 1.1920929E-7 : f32
    %73 = vector.broadcast %cst_21 : f32 to vector<16x128xf32>
    %74 = arith.mulf %72, %73 : vector<16x128xf32>
    %75 = arith.select %25, %74, %1 : vector<16x128xi1>, vector<16x128xf32>
    %c0_22 = arith.constant 0 : index
    %c0_23 = arith.constant 0 : index
    %c0_24 = arith.constant 0 : index
    %c0_25 = arith.constant 0 : index
    %76 = vector.load %arg4[%c0_22, %c0_23, %c0_24, %c0_25] : memref<1x3x16x128xf32, #tpu.memory_space<vmem>>, vector<1x1x16x128xf32>
    %77 = vector.shape_cast %76 : vector<1x1x16x128xf32> to vector<16x128xf32>
    %78 = vector.shape_cast %75 : vector<16x128xf32> to vector<1x1x16x128xf32>
    tpu.vector_store %arg4[%c0_22, %c0_23, %c0_24, %c0_25], %78 {strides = array<i32>} : memref<1x3x16x128xf32, #tpu.memory_space<vmem>>, vector<1x1x16x128xf32>,
    %c1_i32_26 = arith.constant 1 : i32
    %79 = vector.broadcast %c1_i32_26 : i32 to vector<16x128xi32>
    %80 = arith.addi %41, %79 : vector<16x128xi32>
    %c16_i32_27 = arith.constant 16 : i32
    %81 = vector.broadcast %c16_i32_27 : i32 to vector<16x128xi32>
    %82 = arith.shrui %80, %81 : vector<16x128xi32>
    %83 = arith.xori %80, %82 : vector<16x128xi32>
    %c2146121005_i32_28 = arith.constant 2146121005 : i32
    %84 = vector.broadcast %c2146121005_i32_28 : i32 to vector<16x128xi32>
    %85 = arith.muli %83, %84 : vector<16x128xi32>
    %c15_i32_29 = arith.constant 15 : i32
    %86 = vector.broadcast %c15_i32_29 : i32 to vector<16x128xi32>
    %87 = arith.shrui %85, %86 : vector<16x128xi32>
    %88 = arith.xori %85, %87 : vector<16x128xi32>
    %c-2073254261_i32_30 = arith.constant -2073254261 : i32
    %89 = vector.broadcast %c-2073254261_i32_30 : i32 to vector<16x128xi32>
    %90 = arith.muli %88, %89 : vector<16x128xi32>
    %c16_i32_31 = arith.constant 16 : i32
    %91 = vector.broadcast %c16_i32_31 : i32 to vector<16x128xi32>
    %92 = arith.shrui %90, %91 : vector<16x128xi32>
    %93 = arith.xori %90, %92 : vector<16x128xi32>
    %c-1640531527_i32_32 = arith.constant -1640531527 : i32
    %94 = vector.broadcast %c-1640531527_i32_32 : i32 to vector<16x128xi32>
    %95 = arith.xori %93, %94 : vector<16x128xi32>
    %c16_i32_33 = arith.constant 16 : i32
    %96 = vector.broadcast %c16_i32_33 : i32 to vector<16x128xi32>
    %97 = arith.shrui %95, %96 : vector<16x128xi32>
    %98 = arith.xori %95, %97 : vector<16x128xi32>
    %c2146121005_i32_34 = arith.constant 2146121005 : i32
    %99 = vector.broadcast %c2146121005_i32_34 : i32 to vector<16x128xi32>
    %100 = arith.muli %98, %99 : vector<16x128xi32>
    %c15_i32_35 = arith.constant 15 : i32
    %101 = vector.broadcast %c15_i32_35 : i32 to vector<16x128xi32>
    %102 = arith.shrui %100, %101 : vector<16x128xi32>
    %103 = arith.xori %100, %102 : vector<16x128xi32>
    %c-2073254261_i32_36 = arith.constant -2073254261 : i32
    %104 = vector.broadcast %c-2073254261_i32_36 : i32 to vector<16x128xi32>
    %105 = arith.muli %103, %104 : vector<16x128xi32>
    %c16_i32_37 = arith.constant 16 : i32
    %106 = vector.broadcast %c16_i32_37 : i32 to vector<16x128xi32>
    %107 = arith.shrui %105, %106 : vector<16x128xi32>
    %108 = arith.xori %105, %107 : vector<16x128xi32>
    %c9_i32_38 = arith.constant 9 : i32
    %109 = vector.broadcast %c9_i32_38 : i32 to vector<16x128xi32>
    %110 = arith.shrui %108, %109 : vector<16x128xi32>
    %111 = arith.sitofp %110 : vector<16x128xi32> to vector<16x128xf32>
    %cst_39 = arith.constant 1.1920929E-7 : f32
    %112 = vector.broadcast %cst_39 : f32 to vector<16x128xf32>
    %113 = arith.mulf %111, %112 : vector<16x128xf32>
    %114 = arith.select %25, %113, %3 : vector<16x128xi1>, vector<16x128xf32>
    %c0_40 = arith.constant 0 : index
    %c1_41 = arith.constant 1 : index
    %c0_42 = arith.constant 0 : index
    %c0_43 = arith.constant 0 : index
    %115 = vector.load %arg4[%c0_40, %c1_41, %c0_42, %c0_43] : memref<1x3x16x128xf32, #tpu.memory_space<vmem>>, vector<1x1x16x128xf32>
    %116 = vector.shape_cast %115 : vector<1x1x16x128xf32> to vector<16x128xf32>
    %117 = vector.shape_cast %114 : vector<16x128xf32> to vector<1x1x16x128xf32>
    tpu.vector_store %arg4[%c0_40, %c1_41, %c0_42, %c0_43], %117 {strides = array<i32>} : memref<1x3x16x128xf32, #tpu.memory_space<vmem>>, vector<1x1x16x128xf32>,
    %c2_i32 = arith.constant 2 : i32
    %118 = vector.broadcast %c2_i32 : i32 to vector<16x128xi32>
    %119 = arith.addi %41, %118 : vector<16x128xi32>
    %c16_i32_44 = arith.constant 16 : i32
    %120 = vector.broadcast %c16_i32_44 : i32 to vector<16x128xi32>
    %121 = arith.shrui %119, %120 : vector<16x128xi32>
    %122 = arith.xori %119, %121 : vector<16x128xi32>
    %c2146121005_i32_45 = arith.constant 2146121005 : i32
    %123 = vector.broadcast %c2146121005_i32_45 : i32 to vector<16x128xi32>
    %124 = arith.muli %122, %123 : vector<16x128xi32>
    %c15_i32_46 = arith.constant 15 : i32
    %125 = vector.broadcast %c15_i32_46 : i32 to vector<16x128xi32>
    %126 = arith.shrui %124, %125 : vector<16x128xi32>
    %127 = arith.xori %124, %126 : vector<16x128xi32>
    %c-2073254261_i32_47 = arith.constant -2073254261 : i32
    %128 = vector.broadcast %c-2073254261_i32_47 : i32 to vector<16x128xi32>
    %129 = arith.muli %127, %128 : vector<16x128xi32>
    %c16_i32_48 = arith.constant 16 : i32
    %130 = vector.broadcast %c16_i32_48 : i32 to vector<16x128xi32>
    %131 = arith.shrui %129, %130 : vector<16x128xi32>
    %132 = arith.xori %129, %131 : vector<16x128xi32>
    %c-1640531527_i32_49 = arith.constant -1640531527 : i32
    %133 = vector.broadcast %c-1640531527_i32_49 : i32 to vector<16x128xi32>
    %134 = arith.xori %132, %133 : vector<16x128xi32>
    %c16_i32_50 = arith.constant 16 : i32
    %135 = vector.broadcast %c16_i32_50 : i32 to vector<16x128xi32>
    %136 = arith.shrui %134, %135 : vector<16x128xi32>
    %137 = arith.xori %134, %136 : vector<16x128xi32>
    %c2146121005_i32_51 = arith.constant 2146121005 : i32
    %138 = vector.broadcast %c2146121005_i32_51 : i32 to vector<16x128xi32>
    %139 = arith.muli %137, %138 : vector<16x128xi32>
    %c15_i32_52 = arith.constant 15 : i32
    %140 = vector.broadcast %c15_i32_52 : i32 to vector<16x128xi32>
    %141 = arith.shrui %139, %140 : vector<16x128xi32>
    %142 = arith.xori %139, %141 : vector<16x128xi32>
    %c-2073254261_i32_53 = arith.constant -2073254261 : i32
    %143 = vector.broadcast %c-2073254261_i32_53 : i32 to vector<16x128xi32>
    %144 = arith.muli %142, %143 : vector<16x128xi32>
    %c16_i32_54 = arith.constant 16 : i32
    %145 = vector.broadcast %c16_i32_54 : i32 to vector<16x128xi32>
    %146 = arith.shrui %144, %145 : vector<16x128xi32>
    %147 = arith.xori %144, %146 : vector<16x128xi32>
    %c9_i32_55 = arith.constant 9 : i32
    %148 = vector.broadcast %c9_i32_55 : i32 to vector<16x128xi32>
    %149 = arith.shrui %147, %148 : vector<16x128xi32>
    %150 = arith.sitofp %149 : vector<16x128xi32> to vector<16x128xf32>
    %cst_56 = arith.constant 1.1920929E-7 : f32
    %151 = vector.broadcast %cst_56 : f32 to vector<16x128xf32>
    %152 = arith.mulf %150, %151 : vector<16x128xf32>
    %153 = arith.select %25, %152, %5 : vector<16x128xi1>, vector<16x128xf32>
    %c0_57 = arith.constant 0 : index
    %c2_58 = arith.constant 2 : index
    %c0_59 = arith.constant 0 : index
    %c0_60 = arith.constant 0 : index
    %154 = vector.load %arg4[%c0_57, %c2_58, %c0_59, %c0_60] : memref<1x3x16x128xf32, #tpu.memory_space<vmem>>, vector<1x1x16x128xf32>
    %155 = vector.shape_cast %154 : vector<1x1x16x128xf32> to vector<16x128xf32>
    %156 = vector.shape_cast %153 : vector<16x128xf32> to vector<1x1x16x128xf32>
    tpu.vector_store %arg4[%c0_57, %c2_58, %c0_59, %c0_60], %156 {strides = array<i32>} : memref<1x3x16x128xf32, #tpu.memory_space<vmem>>, vector<1x1x16x128xf32>,
    return
  }
  func.func @transform_0(%arg0: i32, %arg1: i32) -> i32 {
    %c0_i32 = arith.constant 0 : i32
    %c0_i32_0 = arith.constant 0 : i32
    return %c0_i32 : i32
  }
  func.func @transform_1(%arg0: i32, %arg1: i32) -> (i32, i32, i32, i32) {
    %c0_i32 = arith.constant 0 : i32
    %c0_i32_0 = arith.constant 0 : i32
    %c0_i32_1 = arith.constant 0 : i32
    return %arg0, %c0_i32, %arg1, %c0_i32_0 : i32, i32, i32, i32
  }
  func.func @transform_2(%arg0: i32, %arg1: i32) -> (i32, i32, i32, i32) {
    %c0_i32 = arith.constant 0 : i32
    %c0_i32_0 = arith.constant 0 : i32
    %c0_i32_1 = arith.constant 0 : i32
    return %arg0, %c0_i32, %arg1, %c0_i32_0 : i32, i32, i32, i32
  }
}

</mosaic_0001>

<bundles_post_ra>
// kernel: tpu_custom_call.1
= control target key start
LH: loop header
LB: loop body
LE: loop exit
PB: predicated region body
PF: predicated region fallthrough
CT: control target
= control target key end

     0   :  { %s968_s0 = inlined_call_operand.<no memory space> [shape: s32[1], index: 0, kind: input, shape index: {}]   ;;  %s969_s1 = inlined_call_operand.hbm [shape: f32[2,3,16,128], index: 1, kind: input, shape index: {}]   ;;  %s970_s2 = inlined_call_operand.hbm [shape: f32[2,3,16,128], index: 2, kind: output, shape index: {}]  }
   0x1   :  { %7 = sst [smem:[#allocation2]] %s968_s0 }
   0x2   :  { %8 = vsyncpa [#allocation4], 0 }
   0x3   :  { %10 = vsyncpa [#allocation4 + $0x1], 0 }
   0x4   :  { %11 = vsyncpa [#allocation5], 0 }
   0x5   :  { %13 = vsyncpa [#allocation5 + $0x1], 0  ;;  %s709_s11 = smov 0   ;;  %s711_s12 = smov 0  }
   0x6   :  { %s713_s13 = smov 0   ;;  %s715_s14 = smov 0  }
   0x7   :  { %s717_s15 = smov 0   ;;  %s719_s16 = smov 0  }
   0x8 LB: > { %s483_s0 = sadd.s32 4294967295, %s683_s16   ;;  %s484_s17 = sadd.s32 4294967294, %s683_s16   ;;  %s683_s16 = sphi %s719_s16, %s19_s16   ;;  %s679_s15 = sphi %s717_s15, %s989_s15   ;;  %s675_s14 = sphi %s715_s14, %s988_s14   ;;  %s671_s13 = sphi %s713_s13, %s987_s13   ;;  %s667_s12 = sphi %s711_s12, %s986_s12   ;;  %s663_s11 = sphi %s709_s11, %s985_s11  }
   0x9   : > { %s31_s18 = sadd.s32 1, %s679_s15  ;;  %s61_s19 = sadd.s32 1, %s671_s13 }
   0xa   : > { %p33_p0 = scmp.ge.s32.totalorder %s31_s18, 2  ;;  %p68_p1 = scmp.ne.s32.totalorder %s671_s13, %s667_s12 }
   0xb   : > { %p69_p2 = scmp.eq.s32.totalorder %s683_s16, 0  ;;  %p74_p3 = scmp.ne.s32.totalorder %s667_s12, %s663_s11 }
   0xc   : > { %s991_s18 = smov (%p33_p0, %s31_s18), 0  ;;  %p75_p5 = scmp.eq.s32.totalorder %s483_s0, 0 }
   0xd   : > { %p750_p4 = por %p69_p2, %p68_p1  ;;  %s56_s21 = ssub.s32 %s679_s15, %s991_s18 }
   0xe   : > { %p100_p6 = scmp.eq.s32.totalorder %s483_s0, 1  ;;  %p59_p7 = scmp.eq.s32.totalorder %s56_s21, 0 }
   0xf   : > { %p756_p8 = por %p75_p5, %p74_p3  ;;  %p106_p10 = scmp.eq.s32.totalorder %s484_s17, 1 }
  0x10   : > { %p760_p9 = por %p100_p6, %p68_p1  ;;  %p517_p13 = scmp.lt.s32.totalorder %s683_s16, 2 }
  0x11   : > { %s765_s24 = scalar_select %p59_p7, %s671_s13, %s61_s19  }
  0x12   : > { %s974_s23 = scalar_select %p760_p9, 1, 0 }
  0x13   : > { %p767_p11 = por %p106_p10, %p74_p3  ;;  %s129_s26 = sand.u32 1, %s671_s13  }
  0x14   : > { %s501_s27 = smul.u32 48, %s129_s26  ;;  %p777_p0 = pnand %p517_p13, %p750_p4 }
  0x15   : > { %s975_s25 = scalar_select %p767_p11, 1, 0 }
  0x16   : > { %s502_s28 = smul.u32 768, %s679_s15  ;;  %s133_s5 = scalar_lea.vmem [#allocation3], %s501_s27 }
  0x17   : > { %s142_s6 = sshll.u32 %s133_s5, 4  ;;  %s789_s7 = scalar_lea.sflag [#allocation4], %s129_s26  ;;  %s786_s6 = int_to_ptr.vmem [resolvable:$true] %s142_s6 }
  0x18   : > { %s784_s4 = scalar_lea.hbm %s969_s1, %s502_s28  ;;  %p573_p3 = pneg %p777_p0 }
  0x19   : > { %s571_s8 = scalar_lea.hbm %s784_s4, 768  ;;  %s576_s0 = scalar_lea.hbm %s969_s1, 1536 }
  0x1a   : > { %p572_p2 = scmp.ne.s32.totalorder %s784_s4, %s571_s8  ;;  %p577_p6 = scmp.lt.u32.totalorder %s784_s4, %s969_s1 }
  0x1b   : > { %p578_p7 = scmp.lt.u32.totalorder %s576_s0, %s571_s8  ;;  %p580_p13 = scmp.lt.u32.totalorder %s571_s8, %s784_s4 }
  0x1c   : > { %p574_p4 = pnand %p573_p3, %p572_p2 }
  0x1d   : > { %p579_p10 = por %p578_p7, %p577_p6 }
  0x1e   : > { %p575_p5 = pneg %p574_p4 }
  0x1f   : > { %p581_p12 = por %p580_p13, %p579_p10 }
  0x21   : > { %p582_p1 = pnand %p581_p12, %p575_p5 }
  0x23   : > { %585 = shalt.err (!%p582_p1)
}
  0x24   : > { %s586_s20 = scalar_lea.vmem %s786_s6, 768  ;;  %s685_s21 = smov [#allocation3]  }
  0x25   : > { %p587_p2 = scmp.ne.s32.totalorder %s786_s6, %s586_s20  ;;  %s591_s26 = sshll.u32 %s685_s21, 4  ;;  %s592_s26 = int_to_ptr.vmem [resolvable:$false] %s591_s26 }
  0x26   : > { %s593_s27 = scalar_lea.vmem %s592_s26, 1536  ;;  %p594_p9 = scmp.lt.s32.totalorder %s786_s6, %s592_s26 }
  0x27   : > { %p589_p4 = pnand %p587_p2, %p573_p3  ;;  %p595_p6 = scmp.lt.s32.totalorder %s593_s27, %s586_s20 }
  0x29   : > { %p590_p11 = pneg %p589_p4  ;;  %p596_p7 = por %p595_p6, %p594_p9 }
  0x2b   : > { %p597_p10 = pnand %p596_p7, %p590_p11 }
  0x2d   : > { %600 = shalt.err (!%p597_p10)
}
  0x2e   : > { %s686_s28 = smov 128   ;;  %s687_s30 = smov 8  }
  0x2f   : > { %512 = dma.hbm_to_vmem [thread:$0]  (!%p777_p0), %s784_s4, 768, %s786_s6, %s789_s7, %s686_s28, %s686_s28, %s687_s30  }
  0x30   : > { %p150_p12 = scmp.lt.s32.totalorder %s683_s16, 3  ;;  %p977_p1 = scmp.ge.s32.totalorder %s683_s16, 1 }
  0x32   : > { %p151_p3 = pnand %p977_p1, %p150_p12 }
  0x33   : > { %s821_s3 = sand.u32 (!%p151_p3), 1, %s667_s12  }
  0x34   : > { %154 = sbr.rel (%p151_p3) target bundleno = 135 (0x87), region = 28  ;;  %s157_s8 = scalar_lea.sflag (!%p151_p3), [#allocation4], %s821_s3 }
  0x35   : > { %s503_s5 = smul.u32 (!%p151_p3), 48, %s821_s3 }
  0x37   : > { %s827_s9 = scalar_lea.vmem (!%p151_p3), [#allocation3], %s503_s5 }
  0x3b   : > { %654 = dma.done.wait (%p756_p8), %s157_s8, 768  }
  0x3c   : > { %656 = vsyncadd (%p756_p8), %s157_s8, 4294966528  ;;  %v222_v0 = vlaneseq  ;;  %s493_s29 = sshll.u32 %s675_s14, 4  ;;  %s235_s4 = sld [smem:[#allocation2]]  ;;  %v835_v33 = vld [vmem:[%s827_s9] sm:$0xff]  ;;  %v838_v34 = vld [vmem:[%s827_s9 + $0x10] sm:$0xff] }
  0x3d   : > { %v228_v1 = vstv %s493_s29  ;;  %v841_v40 = vld [vmem:[%s827_s9 + $0x8] sm:$0xff]  ;;  %v844_v41 = vld [vmem:[%s827_s9 + $0x18] sm:$0xff]  ;;  %v191_v47 = vmax.f32 %v835_v33, %v838_v34  ;;  %v195_v48 = vmin.f32 %v835_v33, %v838_v34  ;;  %v851_v51 = vld [vmem:[%s827_s9 + $0x20] sm:$0xff]  ;;  %s180_s22 = scalar_lea.vmem [#allocation6], %s503_s5  ;;  %s504_s10 = smul.u32 768, %s675_s14 }
  0x3e   : > { %v223_v2 = vshrl.u32 %v222_v0, 7  ;;  %v226_v3 = vand.u32 127, %v222_v0  ;;  %v192_v57 = vmax.f32 %v841_v40, %v844_v41  ;;  %v196_v58 = vmin.f32 %v841_v40, %v844_v41  ;;  %v858_v60 = vld [vmem:[%s827_s9 + $0x28] sm:$0xff]  ;;  %s396_s7 = sshll.u32 %s180_s22, 4  ;;  %s381_s19 = scalar_lea.sflag [#allocation5], %s821_s3  ;;  %s899_s7 = int_to_ptr.vmem [resolvable:$true] %s396_s7 }
  0x3f   : > { %s913_s17 = scalar_lea.hbm %s970_s2, %s504_s10  ;;  %s601_s20 = scalar_lea.vmem %s899_s7, 768 }
  0x40   : > { %v229_v4 = vadd.s32 %v228_v1, %v223_v2  ;;  %v224_v5 = vadd.s32 8, %v223_v2  ;;  %v197_v2 = vmin.f32 %v195_v48, %v851_v51  ;;  %p602_p8 = scmp.ne.s32.totalorder %s899_s7, %s601_s20  ;;  %p982_p9 = scmp.ne.s32.totalorder %s974_s23, 0 }
  0x41   : > { %s688_s21 = smov [#allocation6]  }
  0x42   : > { %v231_v6 = vmul.u32 128, %v229_v4  ;;  %v230_v7 = vadd.s32 %v228_v1, %v224_v5  ;;  %s238_s6 = smul.u32 2246822507, %s235_s4  ;;  %v861_v1 = vmax.f32 %v191_v47, %v851_v51  ;;  %p603_p11 = pnand %p602_p8, %p982_p9 }
  0x43   : > { %s605_s26 = sshll.u32 %s688_s21, 4  ;;  %s606_s26 = int_to_ptr.vmem [resolvable:$false] %s605_s26 }
  0x44   : > { %v233_v8 = vadd.s32 %v231_v6, %v226_v3  ;;  %v232_v9 = vmul.u32 128, %v230_v7  ;;  %v239_v11 = vstv %s238_s6  ;;  %vm213_vm2 = vcmp.ge.f32.partialorder %v861_v1, 0.0  ;;  %p604_p0 = pneg %p603_p11  ;;  %s607_s27 = scalar_lea.vmem %s606_s26, 1536 }
  0x45   : > { %vm217_vm6 = vcmp.le.f32.partialorder %v861_v1, 0.02  ;;  %p608_p5 = scmp.lt.s32.totalorder %s899_s7, %s606_s26  ;;  %p609_p13 = scmp.lt.s32.totalorder %s607_s27, %s601_s20 }
  0x46   : > { %v236_v10 = vmul.u32 3, %v233_v8  ;;  %v234_v12 = vadd.s32 %v232_v9, %v226_v3 }
  0x47   : > { %p610_p2 = por %p609_p13, %p608_p5 }
  0x48   : > { %v240_v13 = vadd.s32 %v239_v11, %v236_v10  ;;  %v237_v14 = vmul.u32 3, %v234_v12  ;;  %v865_v10 = vmax.f32 %v192_v57, %v858_v60 }
  0x49   : > { %p611_p4 = pnand %p610_p2, %p604_p0 }
  0x4a   : > { %v242_v15 = vshrl.u32 %v240_v13, 16  ;;  %v286_v16 = vadd.s32 1, %v240_v13  ;;  %v241_v17 = vadd.s32 %v239_v11, %v237_v14  ;;  %v333_v18 = vadd.s32 2, %v240_v13 }
  0x4b   : > { %v198_v11 = vmin.f32 %v196_v58, %v858_v60  ;;  %vm214_vm9 = vcmp.ge.f32.partialorder %v865_v10, 0.0  ;;  %vm218_vm11 = vcmp.le.f32.partialorder %v865_v10, 0.02 }
  0x4c   : > { %v244_v19 = vxor.u32 %v242_v15, %v240_v13  ;;  %v288_v20 = vshrl.u32 %v286_v16, 16  ;;  %v243_v21 = vshrl.u32 %v241_v17, 16  ;;  %v287_v22 = vadd.s32 1, %v241_v17 }
  0x4d   : > { %v335_v23 = vshrl.u32 %v333_v18, 16  ;;  %v334_v24 = vadd.s32 2, %v241_v17 }
  0x4e   : > { %v246_v25 = vmul.u32 2146121005, %v244_v19  ;;  %v290_v26 = vxor.u32 %v288_v20, %v286_v16  ;;  %v245_v27 = vxor.u32 %v243_v21, %v241_v17  ;;  %v289_v28 = vshrl.u32 %v287_v22, 16 }
  0x4f   : > { %v337_v29 = vxor.u32 %v335_v23, %v333_v18  ;;  %v336_v30 = vshrl.u32 %v334_v24, 16  ;;  %v199_v17 = vsub.f32 %v861_v1, %v197_v2  ;;  %v201_v18 = vadd.f32 1e-08, %v861_v1 }
  0x50   : > { %v248_v31 = vshrl.u32 %v246_v25, 15  ;;  %v292_v32 = vmul.u32 2146121005, %v290_v26  ;;  %v247_v35 = vmul.u32 2146121005, %v245_v27  ;;  %v291_v36 = vxor.u32 %v289_v28, %v287_v22 }
  0x51   : > { %v339_v37 = vmul.u32 2146121005, %v337_v29  ;;  %v338_v38 = vxor.u32 %v336_v30, %v334_v24  ;;  %v200_v26 = vsub.f32 %v865_v10, %v198_v11  ;;  %v202_v27 = vadd.f32 1e-08, %v865_v10 }
  0x52   : > { %v250_v39 = vxor.u32 %v248_v31, %v246_v25  ;;  %v294_v42 = vshrl.u32 %v292_v32, 15  ;;  %v249_v43 = vshrl.u32 %v247_v35, 15  ;;  %v293_v44 = vmul.u32 2146121005, %v291_v36 }
  0x53   : > { %v341_v45 = vshrl.u32 %v339_v37, 15  ;;  %v340_v46 = vmul.u32 2146121005, %v338_v38  ;;  %v207_v36 = vmul.f32 0.02, %v201_v18 }
  0x54   : > { %v252_v49 = vmul.u32 2221713035, %v250_v39  ;;  %v296_v50 = vxor.u32 %v294_v42, %v292_v32  ;;  %v251_v52 = vxor.u32 %v249_v43, %v247_v35  ;;  %v295_v53 = vshrl.u32 %v293_v44, 15 }
  0x55   : > { %v343_v54 = vxor.u32 %v341_v45, %v339_v37  ;;  %v342_v55 = vshrl.u32 %v340_v46, 15  ;;  %v203_v35 = vmul.f32 0.0, %v201_v18  ;;  %v208_v47 = vmul.f32 0.02, %v202_v27 }
  0x56   : > { %v254_v56 = vshrl.u32 %v252_v49, 16  ;;  %v298_v59 = vmul.u32 2221713035, %v296_v50  ;;  %v253_v61 = vmul.u32 2221713035, %v251_v52  ;;  %v297_v62 = vxor.u32 %v295_v53, %v293_v44 }
  0x57   : > { %v345_v63 = vmul.u32 2221713035, %v343_v54  ;;  %v344_v0 = vxor.u32 %v342_v55, %v340_v46  ;;  %v204_v46 = vmul.f32 0.0, %v202_v27  ;;  %vm205_vm0 = vcmp.ge.f32.partialorder %v199_v17, %v203_v35 }
  0x58   : > { %v256_v3 = vxor.u32 %v254_v56, %v252_v49  ;;  %v300_v4 = vshrl.u32 %v298_v59, 16  ;;  %v255_v5 = vshrl.u32 %v253_v61, 16  ;;  %v299_v6 = vmul.u32 2221713035, %v297_v62 }
  0x59   : > { %v347_v7 = vshrl.u32 %v345_v63, 16  ;;  %v346_v8 = vmul.u32 2221713035, %v344_v0  ;;  %vm209_vm1 = vcmp.le.f32.partialorder %v199_v17, %v207_v36  ;;  %vm206_vm4 = vcmp.ge.f32.partialorder %v200_v26, %v204_v46 }
  0x5a   : > { %v258_v9 = vxor.u32 2654435769, %v256_v3  ;;  %v302_v12 = vxor.u32 %v300_v4, %v298_v59  ;;  %v257_v13 = vxor.u32 %v255_v5, %v253_v61  ;;  %v301_v14 = vshrl.u32 %v299_v6, 16  ;;  %vm211_vm3 = vmand %vm205_vm0, %vm209_vm1 }
  0x5b   : > { %v349_v15 = vxor.u32 %v347_v7, %v345_v63  ;;  %v348_v16 = vshrl.u32 %v346_v8, 16  ;;  %vm210_vm5 = vcmp.le.f32.partialorder %v200_v26, %v208_v47  ;;  %vm215_vm7 = vmand %vm211_vm3, %vm213_vm2 }
  0x5c   : > { %v260_v19 = vshrl.u32 %v258_v9, 16  ;;  %v304_v20 = vxor.u32 2654435769, %v302_v12  ;;  %v259_v21 = vxor.u32 2654435769, %v257_v13  ;;  %v303_v22 = vxor.u32 %v301_v14, %v299_v6  ;;  %vm212_vm8 = vmand %vm206_vm4, %vm210_vm5 }
  0x5d   : > { %v351_v23 = vxor.u32 2654435769, %v349_v15  ;;  %v350_v24 = vxor.u32 %v348_v16, %v346_v8  ;;  %vm882_vm10 = vmand %vm215_vm7, %vm217_vm6 }
  0x5e   : > { %v262_v25 = vxor.u32 %v260_v19, %v258_v9  ;;  %v306_v28 = vshrl.u32 %v304_v20, 16  ;;  %v261_v29 = vshrl.u32 %v259_v21, 16  ;;  %v305_v30 = vxor.u32 2654435769, %v303_v22  ;;  %vm216_vm12 = vmand %vm212_vm8, %vm214_vm9 }
  0x5f   : > { %v353_v31 = vshrl.u32 %v351_v23, 16  ;;  %v352_v32 = vxor.u32 2654435769, %v350_v24  ;;  %vm894_vm13 = vmand %vm216_vm12, %vm218_vm11 }
  0x60   : > { %v264_v37 = vmul.u32 2146121005, %v262_v25  ;;  %v308_v38 = vxor.u32 %v306_v28, %v304_v20  ;;  %v263_v39 = vxor.u32 %v261_v29, %v259_v21  ;;  %v307_v42 = vshrl.u32 %v305_v30, 16 }
  0x61   : > { %v355_v43 = vxor.u32 %v353_v31, %v351_v23  ;;  %v354_v44 = vshrl.u32 %v352_v32, 16 }
  0x62   : > { %v266_v45 = vshrl.u32 %v264_v37, 15  ;;  %v310_v48 = vmul.u32 2146121005, %v308_v38  ;;  %v265_v49 = vmul.u32 2146121005, %v263_v39  ;;  %v309_v50 = vxor.u32 %v307_v42, %v305_v30 }
  0x63   : > { %v357_v52 = vmul.u32 2146121005, %v355_v43  ;;  %v356_v53 = vxor.u32 %v354_v44, %v352_v32 }
  0x64   : > { %v268_v54 = vxor.u32 %v266_v45, %v264_v37  ;;  %v312_v55 = vshrl.u32 %v310_v48, 15  ;;  %v267_v56 = vshrl.u32 %v265_v49, 15  ;;  %v311_v57 = vmul.u32 2146121005, %v309_v50 }
  0x65   : > { %v359_v58 = vshrl.u32 %v357_v52, 15  ;;  %v358_v59 = vmul.u32 2146121005, %v356_v53 }
  0x66   : > { %v270_v61 = vmul.u32 2221713035, %v268_v54  ;;  %v314_v62 = vxor.u32 %v312_v55, %v310_v48  ;;  %v269_v63 = vxor.u32 %v267_v56, %v265_v49  ;;  %v313_v0 = vshrl.u32 %v311_v57, 15 }
  0x67   : > { %v361_v2 = vxor.u32 %v359_v58, %v357_v52  ;;  %v360_v3 = vshrl.u32 %v358_v59, 15 }
  0x68   : > { %v272_v4 = vshrl.u32 %v270_v61, 16  ;;  %v316_v5 = vmul.u32 2221713035, %v314_v62  ;;  %v271_v6 = vmul.u32 2221713035, %v269_v63  ;;  %v315_v7 = vxor.u32 %v313_v0, %v311_v57 }
  0x69   : > { %v363_v8 = vmul.u32 2221713035, %v361_v2  ;;  %v362_v9 = vxor.u32 %v360_v3, %v358_v59 }
  0x6a   : > { %v274_v11 = vxor.u32 %v272_v4, %v270_v61  ;;  %v318_v12 = vshrl.u32 %v316_v5, 16  ;;  %v273_v13 = vshrl.u32 %v271_v6, 16  ;;  %v317_v14 = vmul.u32 2221713035, %v315_v7 }
  0x6b   : > { %v365_v15 = vshrl.u32 %v363_v8, 16  ;;  %v364_v16 = vmul.u32 2221713035, %v362_v9 }
  0x6c   : > { %v276_v17 = vshrl.u32 %v274_v11, 9  ;;  %v320_v18 = vxor.u32 %v318_v12, %v316_v5  ;;  %v275_v19 = vxor.u32 %v273_v13, %v271_v6  ;;  %v319_v20 = vshrl.u32 %v317_v14, 16 }
  0x6d   : > { %v367_v21 = vxor.u32 %v365_v15, %v363_v8  ;;  %v366_v22 = vshrl.u32 %v364_v16, 16 }
  0x6e   : > { %v278_v24 = vcvt.s32.f32 %v276_v17  ;;  %v322_v25 = vshrl.u32 %v320_v18, 9  ;;  %v277_v26 = vshrl.u32 %v275_v19, 9  ;;  %v321_v27 = vxor.u32 %v319_v20, %v317_v14 }
  0x6f   : > { %v369_v28 = vshrl.u32 %v367_v21, 9  ;;  %v368_v29 = vxor.u32 %v366_v22, %v364_v16 }
  0x70   : > { %v280_v30 = vmul.f32 1.1920929e-07, %v278_v24  ;;  %v324_v31 = vcvt.s32.f32 %v322_v25  ;;  %v279_v1 = vcvt.s32.f32 %v277_v26  ;;  %v323_v32 = vshrl.u32 %v321_v27, 9 }
  0x71   : > { %v371_v35 = vcvt.s32.f32 %v369_v28  ;;  %v370_v36 = vshrl.u32 %v368_v29, 9 }
  0x72   : > { %v282_v37 = vsel %vm882_vm10, %v280_v30, %v835_v33  ;;  %v326_v39 = vmul.f32 1.1920929e-07, %v324_v31  ;;  %v281_v42 = vmul.f32 1.1920929e-07, %v279_v1  ;;  %v325_v43 = vcvt.s32.f32 %v323_v32 }
  0x73   : > { %284 = vst [vmem:[%s180_s22] sm:$0xff] %v282_v37  ;;  %v373_v44 = vmul.f32 1.1920929e-07, %v371_v35  ;;  %v372_v45 = vcvt.s32.f32 %v370_v36 }
  0x74   : > { %v328_v33 = vsel %vm882_vm10, %v326_v39, %v838_v34  ;;  %v283_v10 = vsel %vm894_vm13, %v281_v42, %v841_v40  ;;  %v327_v46 = vmul.f32 1.1920929e-07, %v325_v43 }
  0x75   : > { %494 = vst [vmem:[%s180_s22 + $0x10] sm:$0xff] %v328_v33  ;;  %v375_v47 = vsel %vm882_vm10, %v373_v44, %v851_v51  ;;  %v374_v48 = vmul.f32 1.1920929e-07, %v372_v45  ;;  %285 = vst [vmem:[%s180_s22 + $0x8] sm:$0xff] %v283_v10 }
  0x76   : > { %496 = vst [vmem:[%s180_s22 + $0x20] sm:$0xff] %v375_v47  ;;  %v329_v34 = vsel %vm894_vm13, %v327_v46, %v844_v41 }
  0x77   : > { %v376_v40 = vsel %vm894_vm13, %v374_v48, %v858_v60  ;;  %495 = vst [vmem:[%s180_s22 + $0x18] sm:$0xff] %v329_v34 }
  0x78   : > { %497 = vst [vmem:[%s180_s22 + $0x28] sm:$0xff] %v376_v40 }
  0x79   : > { %614 = shalt.err (!%p611_p4)
}
  0x7a   : > { %s615_s28 = scalar_lea.hbm %s913_s17, 768  ;;  %s619_s8 = scalar_lea.hbm %s970_s2, 1536 }
  0x7b   : > { %p616_p6 = scmp.ne.s32.totalorder %s913_s17, %s615_s28  ;;  %p620_p12 = scmp.lt.u32.totalorder %s913_s17, %s970_s2 }
  0x7c   : > { %p621_p1 = scmp.lt.u32.totalorder %s619_s8, %s615_s28  ;;  %p623_p8 = scmp.lt.u32.totalorder %s615_s28, %s913_s17 }
  0x7d   : > { %p617_p7 = pnand %p616_p6, %p982_p9 }
  0x7e   : > { %p622_p3 = por %p621_p1, %p620_p12 }
  0x7f   : > { %p618_p10 = pneg %p617_p7 }
  0x80   : > { %p624_p11 = por %p623_p8, %p622_p3 }
  0x82   : > { %p625_p0 = pnand %p624_p11, %p618_p10 }
  0x84   : > { %628 = shalt.err (!%p625_p0)
}
  0x85   : > { %s689_s4 = smov 128   ;;  %s690_s6 = smov 8  }
  0x86   : > { %507 = dma.vmem_to_hbm [thread:$0]  (%p982_p9), %s899_s7, 768, %s913_s17, %s381_s19, %s689_s4, %s689_s4, %s690_s6  }
  0x87 PF: > { %s411_s22 = sand.u32 1, %s663_s11   ;;  %p983_p5 = scmp.ne.s32.totalorder %s975_s25, 0 }
  0x88   : > { %p984_p13 = scmp.ge.s32.totalorder %s683_s16, 2  ;;  %s412_s10 = scalar_lea.sflag [#allocation5], %s411_s22 }
  0x8a   : > { %p514_p2 = pnand %p984_p13, %p983_p5 }
  0x8c   : > { %658 = dma.done.wait (!%p514_p2), %s412_s10, 768  }
  0x8d   : > { %660 = vsyncadd (!%p514_p2), %s412_s10, 4294966528  ;;  %s19_s16 = sadd.s32 1, %s683_s16   ;;  %s985_s11 = smov %s667_s12 }
  0x8e   : > { %p16_p4 = scmp.ge.s32.totalorder %s19_s16, 4   ;;  %s986_s12 = smov %s671_s13 }
  0x8f   : > { %s987_s13 = smov %s765_s24  ;;  %s988_s14 = smov %s679_s15 }
  0x90   : > { %s989_s15 = smov %s991_s18  ;;  %18 = sbr.rel (!%p16_p4) target bundleno = 8 (0x8), region = 77 }
  0x97   :  { %417 = vsyncpa [#allocation4], 1 }
  0x98   :  { %419 = vsyncpa [#allocation4 + $0x1], 1 }
  0x99   :  { %420 = vsyncpa [#allocation5], 1 }
  0x9a   :  { %422 = vsyncpa [#allocation5 + $0x1], 1 }

</bundles_post_ra>
